<compile_context>
chip_gen: v6e
topology: v6e:2x2x1
jax: 0.10.0
libtpu: 0.0.40
codegen_flags: <defaults>
</compile_context>

<pallas_src>
import math
import jax
import jax.numpy as jnp
import numpy as np
from jax.experimental import pallas as pl
from jax.experimental.pallas import tpu as pltpu

STYLE_DIM = 512
LIP_DIM = 20
POSE_DIM = 6
EXP_DIM = 10  # unused in forward(), kept for parity with __init__


# ---------------------------------------------------------------------------
# Pallas kernel: latent_poseD = wa + wa_t @ W_total + b_total
# ---------------------------------------------------------------------------
def latent_kernel(wa_ref, wa_t_ref, w_ref, b_ref, out_ref):
    # one bf16 MXU matmul with f32 accumulation + f32 bias / residual add
    directions = jnp.dot(wa_t_ref[...].astype(jnp.bfloat16), w_ref[...],
                         preferred_element_type=jnp.float32)
    out_ref[...] = wa_ref[...] + directions + b_ref[...]


def latent_pallas(wa, wa_t, kp):
    B = wa.shape[0]
    # bf16 LHS packs two rows per sublane -> pad batch to a multiple of 16 rows
    B_pad = max(16, ((B + 15) // 16) * 16)
    # batch tile: single tile for small batches, 256-row tiles for large ones
    if B_pad <= 256:
        TB = B_pad
    else:
        TB = 256
        B_pad = ((B_pad + TB - 1) // TB) * TB

    if B_pad != B:
        pad = ((0, B_pad - B), (0, 0))
        wa_p = jnp.pad(wa, pad)
        wa_t_p = jnp.pad(wa_t, pad)
    else:
        wa_p, wa_t_p = wa, wa_t

    w_total = kp["w_total"]    # (512, 512) bf16
    b_total = kp["b_total"]    # (1, 512)  f32

    grid = (B_pad // TB,)
    flops = 2 * B_pad * STYLE_DIM * STYLE_DIM
    bytes_accessed = (w_total.size * w_total.dtype.itemsize
                      + b_total.size * b_total.dtype.itemsize
                      + 3 * B_pad * STYLE_DIM * 4)

    out = pl.pallas_call(
        latent_kernel,
        out_shape=jax.ShapeDtypeStruct((B_pad, STYLE_DIM), jnp.float32),
        grid=grid,
        in_specs=[
            pl.BlockSpec((TB, STYLE_DIM), lambda i: (i, 0)),          # wa
            pl.BlockSpec((TB, STYLE_DIM), lambda i: (i, 0)),          # wa_t
            pl.BlockSpec((STYLE_DIM, STYLE_DIM), lambda i: (0, 0)),   # W_total (resident)
            pl.BlockSpec((1, STYLE_DIM), lambda i: (0, 0)),           # b_total (resident)
        ],
        out_specs=pl.BlockSpec((TB, STYLE_DIM), lambda i: (i, 0)),
        compiler_params=pltpu.CompilerParams(
            dimension_semantics=("parallel",)),
        cost_estimate=pl.CostEstimate(flops=flops, transcendentals=0,
                                      bytes_accessed=bytes_accessed),
    )(wa_p, wa_t_p, w_total, b_total)
    return out[:B]


# ---------------------------------------------------------------------------
# Parameter construction (deterministic; EqualLinear semantics) + offline fold
# ---------------------------------------------------------------------------
def equal_linear_params(key, in_dim, out_dim):
    # EqualLinear: weight ~ N(0,1) (out,in), scale = 1/sqrt(in_dim), bias = 0
    # effective linear: x @ (weight*scale).T + bias
    w = jax.random.normal(key, (out_dim, in_dim), jnp.float32)
    scale = 1.0 / math.sqrt(in_dim)
    return (w * scale).T, jnp.zeros((1, out_dim), jnp.float32)  # (in,out), (1,out)


def _fold_affine(layers):
    """Fold a chain of (W, b) affine layers (x @ W + b) into one (W_tot, b_tot)."""
    w_tot = jnp.eye(layers[0][0].shape[0], dtype=jnp.float32)
    b_tot = jnp.zeros((1, layers[0][0].shape[0]), jnp.float32)
    for w, b in layers:
        w_tot = w_tot @ w
        b_tot = b_tot @ w + b
    return w_tot, b_tot


def make_params(key):
    keys = jax.random.split(key, 16)

    # shared fc (4 layers) + lip_fc[0:2] + pose_fc[0:2] : all 512x512
    ws, bs = [], []
    for i in range(8):
        w, b = equal_linear_params(keys[i], STYLE_DIM, STYLE_DIM)
        ws.append(w)
        bs.append(b)
    # order: fc0..3, lip0, lip1, pose0, pose1
    fc_w, fc_b = ws[:4], bs[:4]
    lip0_w, lip0_b, lip1_w, lip1_b = ws[4], bs[4], ws[5], bs[5]
    pose0_w, pose0_b, pose1_w, pose1_b = ws[6], bs[6], ws[7], bs[7]

    lip_head_w, lip_head_b = equal_linear_params(keys[8], STYLE_DIM, LIP_DIM)
    pose_head_w, pose_head_b = equal_linear_params(keys[9], STYLE_DIM, POSE_DIM)

    # Direction(lip_dim, pose_dim).weight : (512, lip+pose)
    dir_w = jax.random.normal(keys[10], (STYLE_DIM, LIP_DIM + POSE_DIM), jnp.float32)
    # torch.qr(weight + 1e-8) (reduced) -> Q: (512, 26)
    # NOTE: QR column signs may differ from torch.qr; consistent within this script.
    Q, _ = jnp.linalg.qr(dir_w + 1e-8)
    qt = Q.T                                      # (26, 512)
    qt_lip = qt[:LIP_DIM]                         # (20, 512)
    qt_pose = qt[LIP_DIM:]                        # (6, 512)

    # ---- offline fold of the entire affine latent path (f32) ----
    shared_layers = list(zip(fc_w, fc_b))
    w_shared, b_shared = _fold_affine(shared_layers)                       # 512->512

    w_lip, b_lip = _fold_affine(shared_layers + [(lip0_w, lip0_b),
                                                 (lip1_w, lip1_b),
                                                 (lip_head_w, lip_head_b)])    # 512->20
    w_pose, b_pose = _fold_affine(shared_layers + [(pose0_w, pose0_b),
                                                   (pose1_w, pose1_b),
                                                   (pose_head_w, pose_head_b)])  # 512->6

    # directions_D = alpha_D @ Q.T  ==>  wa_t @ W_total + b_total
    w_total = w_lip @ qt_lip + w_pose @ qt_pose        # (512, 512)
    b_total = b_lip @ qt_lip + b_pose @ qt_pose        # (1, 512)

    kernel_params = dict(
        w_total=w_total.astype(jnp.bfloat16),          # (512, 512) bf16
        b_total=b_total,                               # (1, 512)  f32
    )
    del w_shared, b_shared  # folded into w_lip / w_pose already

    # ---- original (unfolded) f32 parameters, for the reference path ----
    ref_params = dict(
        fc_w=jnp.stack(fc_w), fc_b=jnp.stack(fc_b),
        lip0_w=lip0_w, lip0_b=lip0_b, lip1_w=lip1_w, lip1_b=lip1_b,
        pose0_w=pose0_w, pose0_b=pose0_b, pose1_w=pose1_w, pose1_b=pose1_b,
        lip_head_w=lip_head_w, lip_head_b=lip_head_b,
        pose_head_w=pose_head_w, pose_head_b=pose_head_b,
        qt_lip=qt_lip, qt_pose=qt_pose,
    )

    # stub encoder projection (TODO(synk): real Encoder not provided)
    enc_proj = jax.random.normal(keys[11], (3, STYLE_DIM), jnp.float32) / math.sqrt(3.0)

    return dict(kernel=kernel_params, ref=ref_params, enc_proj=enc_proj)


# ---------------------------------------------------------------------------
# Stub encoder + full forward
# ---------------------------------------------------------------------------
def stub_encoder(img, enc_proj):
    # img: (B, C, H, W) NCHW -> global average pool -> linear to style_dim
    pooled = jnp.mean(img, axis=(2, 3))           # (B, C)
    return pooled @ enc_proj                      # (B, 512)


def generator_forward(img_source, img_drive, params, h_start=None):
    wa = stub_encoder(img_source, params["enc_proj"])      # (B, 512)
    wa_t = stub_encoder(img_drive, params["enc_proj"])     # (B, 512)
    latent_poseD = latent_pallas(wa, wa_t, params["kernel"])  # Pallas hot path
    # TODO(synk): img_recon = Synthesis_with_EAM(latent_poseD, None, feats)
    return latent_poseD


# ---------------------------------------------------------------------------
# Pure-JAX f32 reference of the original (unfolded) latent math
# ---------------------------------------------------------------------------
def latent_reference(wa, wa_t, p):
    x = wa_t
    for i in range(4):
        x = x @ p["fc_w"][i] + p["fc_b"][i]
    lip = x @ p["lip0_w"] + p["lip0_b"]
    lip = lip @ p["lip1_w"] + p["lip1_b"]
    lip = lip @ p["lip_head_w"] + p["lip_head_b"]          # (B, 20)
    pose = x @ p["pose0_w"] + p["pose0_b"]
    pose = pose @ p["pose1_w"] + p["pose1_b"]
    pose = pose @ p["pose_head_w"] + p["pose_head_b"]      # (B, 6)
    alpha = jnp.concatenate([lip, pose], axis=-1)           # (B, 26)
    qt = jnp.concatenate([p["qt_lip"], p["qt_pose"]], axis=0)
    directions = alpha @ qt                                  # (B, 512)
    return wa + directions


if __name__ == "__main__":
    key = jax.random.PRNGKey(0)
    pkey, k1, k2 = jax.random.split(key, 3)
    params = make_params(pkey)

    B, C, H, W = 2, 3, 16, 16
    img_source = jax.random.normal(k1, (B, C, H, W), jnp.float32)
    img_drive = jax.random.normal(k2, (B, C, H, W), jnp.float32)

    out = generator_forward(img_source, img_drive, params)
    out = jax.block_until_ready(out)

    # correctness check against a pure-f32 JAX reference of the original latent
    # math (kernel uses one bf16 matmul with f32 accumulation on a folded weight)
    wa = stub_encoder(img_source, params["enc_proj"])
    wa_t = stub_encoder(img_drive, params["enc_proj"])
    ref = latent_reference(wa, wa_t, params["ref"])
    np.testing.assert_allclose(np.asarray(out), np.asarray(ref), rtol=2e-2, atol=2e-3)

    print("KERNEL_OK")
</pallas_src>

<mosaic_0001>
module attributes {stable_mosaic.version = 11 : i64} {
  func.func @latent_kernel(%arg0: i32, %arg1: memref<16x512xf32, #tpu.memory_space<vmem>>, %arg2: memref<16x512xf32, #tpu.memory_space<vmem>>, %arg3: memref<512x512xbf16, #tpu.memory_space<vmem>>, %arg4: memref<1x512xf32, #tpu.memory_space<vmem>>, %arg5: memref<16x512xf32, #tpu.memory_space<vmem>>) attributes {dimension_semantics = [#tpu.dimension_semantics<parallel>], iteration_bounds = array<i64: 1>, scalar_prefetch = 0 : i64, scratch_operands = 0 : i64, tpu.core_type = #tpu.core_type<tc>, window_params = [{transform_indices = @transform_0, window_bounds = array<i64: 16, 512>}, {transform_indices = @transform_1, window_bounds = array<i64: 16, 512>}, {pipeline_mode = #tpu.pipeline_mode<synchronous>, transform_indices = @transform_2, window_bounds = array<i64: 512, 512>}, {pipeline_mode = #tpu.pipeline_mode<synchronous>, transform_indices = @transform_3, window_bounds = array<i64: 1, 512>}, {transform_indices = @transform_4, window_bounds = array<i64: 16, 512>}]} {
    %c0 = arith.constant 0 : index
    %c0_0 = arith.constant 0 : index
    %0 = vector.load %arg2[%c0, %c0_0] : memref<16x512xf32, #tpu.memory_space<vmem>>, vector<16x512xf32>
    %1 = arith.truncf %0 : vector<16x512xf32> to vector<16x512xbf16>
    %c0_1 = arith.constant 0 : index
    %c0_2 = arith.constant 0 : index
    %2 = vector.load %arg3[%c0_1, %c0_2] : memref<512x512xbf16, #tpu.memory_space<vmem>>, vector<512x512xbf16>
    %cst = arith.constant dense<0.000000e+00> : vector<16x512xf32>
    %3 = tpu.matmul %1, %2, %cst {dimension_numbers = #tpu.dot_dimension_numbers<[1], [0], [0], [1], [0, 0, 1, 1], [], []>} : vector<16x512xbf16>, vector<512x512xbf16>, vector<16x512xf32> -> vector<16x512xf32>
    %c0_3 = arith.constant 0 : index
    %c0_4 = arith.constant 0 : index
    %4 = vector.load %arg1[%c0_3, %c0_4] : memref<16x512xf32, #tpu.memory_space<vmem>>, vector<16x512xf32>
    %5 = arith.addf %4, %3 : vector<16x512xf32>
    %c0_5 = arith.constant 0 : index
    %c0_6 = arith.constant 0 : index
    %6 = vector.load %arg4[%c0_5, %c0_6] : memref<1x512xf32, #tpu.memory_space<vmem>>, vector<1x512xf32>
    %7 = vector.broadcast %6 : vector<1x512xf32> to vector<16x512xf32>
    %8 = arith.addf %5, %7 : vector<16x512xf32>
    %c0_7 = arith.constant 0 : index
    %c0_8 = arith.constant 0 : index
    %9 = vector.load %arg5[%c0_7, %c0_8] : memref<16x512xf32, #tpu.memory_space<vmem>>, vector<16x512xf32>
    tpu.vector_store %arg5[%c0_7, %c0_8], %8 {strides = array<i32>} : memref<16x512xf32, #tpu.memory_space<vmem>>, vector<16x512xf32>,
    return
  }
  func.func @transform_0(%arg0: i32) -> (i32, i32) {
    %c0_i32 = arith.constant 0 : i32
    %c0_i32_0 = arith.constant 0 : i32
    return %arg0, %c0_i32 : i32, i32
  }
  func.func @transform_1(%arg0: i32) -> (i32, i32) {
    %c0_i32 = arith.constant 0 : i32
    %c0_i32_0 = arith.constant 0 : i32
    return %arg0, %c0_i32 : i32, i32
  }
  func.func @transform_2(%arg0: i32) -> (i32, i32) {
    %c0_i32 = arith.constant 0 : i32
    %c0_i32_0 = arith.constant 0 : i32
    %c0_i32_1 = arith.constant 0 : i32
    return %c0_i32, %c0_i32_0 : i32, i32
  }
  func.func @transform_3(%arg0: i32) -> (i32, i32) {
    %c0_i32 = arith.constant 0 : i32
    %c0_i32_0 = arith.constant 0 : i32
    %c0_i32_1 = arith.constant 0 : i32
    return %c0_i32, %c0_i32_0 : i32, i32
  }
  func.func @transform_4(%arg0: i32) -> (i32, i32) {
    %c0_i32 = arith.constant 0 : i32
    %c0_i32_0 = arith.constant 0 : i32
    return %arg0, %c0_i32 : i32, i32
  }
}

</mosaic_0001>

<bundles_post_ra>
// kernel: tpu_custom_call.1
= control target key start
LH: loop header
LB: loop body
LE: loop exit
PB: predicated region body
PF: predicated region fallthrough
CT: control target
= control target key end

     0   :  { %9 = vsyncpa [#allocation3], 0  ;;  %s1562_s0 = inlined_call_operand.hbm [shape: f32[16,512], index: 0, kind: input, shape index: {}]   ;;  %s1563_s1 = inlined_call_operand.hbm [shape: f32[16,512], index: 1, kind: input, shape index: {}]   ;;  %s1564_s2 = inlined_call_operand.hbm [shape: bf16[512,512], index: 2, kind: input, shape index: {}]   ;;  %s1565_s3 = inlined_call_operand.vmem [shape: f32[1,512], index: 3, kind: input, shape index: {}]   ;;  %s1566_s4 = inlined_call_operand.hbm [shape: f32[16,512], index: 4, kind: output, shape index: {}]  }
   0x1   :  { %10 = vsyncpa [#allocation6], 0 }
   0x2   :  { %11 = vsyncpa [#allocation4], 0  ;;  %s1497_s15 = smov [#allocation5]   ;;  %s1498_s17 = smov [#allocation2]  }
   0x3   :  { %s29_s16 = sshll.u32 %s1497_s15, 4  ;;  %s17_s18 = sshll.u32 %s1498_s17, 4  ;;  %s30_s16 = int_to_ptr.vmem [resolvable:$true] %s29_s16  ;;  %s18_s18 = int_to_ptr.vmem [resolvable:$true] %s17_s18 }
   0x4   :  { %s1419_s19 = scalar_lea.vmem %s30_s16, 1024  ;;  %p1424_p1 = scmp.lt.s32.totalorder %s30_s16, %s30_s16 }
   0x5   :  { %p1420_p0 = scmp.ne.s32.totalorder %s30_s16, %s1419_s19  ;;  %p1425_p2 = scmp.lt.s32.totalorder %s1419_s19, %s1419_s19 }
   0x7   :  { %p1426_p3 = por %p1425_p2, %p1424_p1 }
   0x9   :  { %p1427_p4 = pnand %p1426_p3, %p1420_p0 }
   0xb   :  { %1430 = shalt.err (!%p1427_p4)
}
   0xc   :  { %s1499_s20 = smov 512   ;;  %s1500_s21 = smov 32  }
   0xd   :  { %35 = dma.hbm_to_vmem [thread:$0]  %s1563_s1, 1024, %s30_s16, [#allocation6], %s1499_s20, %s1499_s20, %s1500_s21  }
   0xe   :  { %s1439_s24 = scalar_lea.vmem %s18_s18, 1024  ;;  %p1444_p6 = scmp.lt.s32.totalorder %s18_s18, %s18_s18 }
   0xf   :  { %p1440_p5 = scmp.ne.s32.totalorder %s18_s18, %s1439_s24  ;;  %p1445_p7 = scmp.lt.s32.totalorder %s1439_s24, %s1439_s24 }
  0x11   :  { %p1446_p8 = por %p1445_p7, %p1444_p6 }
  0x13   :  { %p1447_p9 = pnand %p1446_p8, %p1440_p5 }
  0x15   :  { %1450 = shalt.err (!%p1447_p9)
}
  0x16   :  { %23 = dma.hbm_to_vmem [thread:$0]  %s1562_s0, 1024, %s18_s18, [#allocation3], %s1499_s20, %s1499_s20, %s1500_s21  }
  0x17   :  { %s1501_s27 = smov [#allocation7]  }
  0x18   :  { %s41_s28 = sshll.u32 %s1501_s27, 4  ;;  %s42_s28 = int_to_ptr.vmem [resolvable:$true] %s41_s28 }
  0x19   :  { %s1459_s29 = scalar_lea.vmem %s42_s28, 16384  ;;  %p1464_p11 = scmp.lt.s32.totalorder %s42_s28, %s42_s28 }
  0x1a   :  { %p1460_p10 = scmp.ne.s32.totalorder %s42_s28, %s1459_s29  ;;  %p1465_p12 = scmp.lt.s32.totalorder %s1459_s29, %s1459_s29 }
  0x1c   :  { %p1466_p13 = por %p1465_p12, %p1464_p11 }
  0x1e   :  { %p1467_p0 = pnand %p1466_p13, %p1460_p10 }
  0x20   :  { %1470 = shalt.err (!%p1467_p0)
}
  0x21   :  { %s1502_s1 = smov 256   ;;  %s1503_s30 = smov 16  }
  0x22   :  { %47 = dma.hbm_to_vmem [thread:$0]  %s1564_s2, 16384, %s42_s28, [#allocation6], %s1502_s1, %s1502_s1, %s1503_s30  }
  0x23   :  { %1491 = dma.done.wait [#allocation3], 1024  }
  0x24   :  { %1492 = vsyncadd [#allocation3], 4294966272 }
  0x25   :  { %1493 = dma.done.wait [#allocation6], 17408  }
  0x26   :  { %1494 = vsyncadd [#allocation6], 4294949888  ;;  %v1219_v0 = vld [vmem:[#allocation7 + $0xe4] ss:$16 sps:$4 sm:$0xff]   ;;  %v1223_v2 = vld [vmem:[#allocation7 + $0xe0] ss:$16 sps:$4 sm:$0xff]  }
  0x27   :  { %v1221_v1 = vld [vmem:[#allocation7 + $0x2e4] ss:$16 sps:$4 sm:$0xff]   ;;  %839 = vmatprep.subr.bf16.mxu0 %v1219_v0  ;;  %v1224_v3 = vld [vmem:[#allocation7 + $0x2e0] ss:$16 sps:$4 sm:$0xff]   ;;  %v60_v46 = vld [vmem:[#allocation5 + $0x8] sm:$0xff] }
  0x28   :  { %882 = vmatprep.subr.bf16.mxu1 %v1221_v1  ;;  %v1225_v4 = vld [vmem:[#allocation7 + $0xc4] ss:$16 sps:$4 sm:$0xff]   ;;  %840 = vmatpush1.bf16.msra.mxu0 %v1223_v2  ;;  %v1229_v6 = vld [vmem:[#allocation7 + $0xc0] ss:$16 sps:$4 sm:$0xff]   ;;  %v64_v47 = vld [vmem:[#allocation5 + $0x28] sm:$0xff] }
  0x29   :  { %883 = vmatpush1.bf16.msra.mxu1 %v1224_v3  ;;  %v1227_v5 = vld [vmem:[#allocation7 + $0x2c4] ss:$16 sps:$4 sm:$0xff]   ;;  %841 = vmatprep.subr.bf16.mxu0 %v1225_v4  ;;  %v1230_v7 = vld [vmem:[#allocation7 + $0x2c0] ss:$16 sps:$4 sm:$0xff]   ;;  %v62_v48 = vld [vmem:[#allocation5 + $0x18] sm:$0xff]  ;;  %v68_v53 = vpack.c.bf16 %v64_v47, %v60_v46 }
  0x2a   :  { %884 = vmatprep.subr.bf16.mxu1 %v1227_v5  ;;  %v1231_v8 = vld [vmem:[#allocation7 + $0xa4] ss:$16 sps:$4 sm:$0xff]   ;;  %v1235_v10 = vld [vmem:[#allocation7 + $0xa0] ss:$16 sps:$4 sm:$0xff]   ;;  %v66_v49 = vld [vmem:[#allocation5 + $0x38] sm:$0xff] }
  0x2b   :  { %v1233_v9 = vld [vmem:[#allocation7 + $0x2a4] ss:$16 sps:$4 sm:$0xff]   ;;  %v1236_v11 = vld [vmem:[#allocation7 + $0x2a0] ss:$16 sps:$4 sm:$0xff]   ;;  %v70_v54 = vpack.c.bf16 %v66_v49, %v62_v48  ;;  %871 = vmatprep.mubr.bf16.mxu0 %v68_v53  ;;  %v1363_v46 = vld [vmem:[#allocation7 + $0x1e8] ss:$16 sps:$4 sm:$0xff]  }
  0x2c   :  { %842 = vmatpush1.bf16.msra.mxu0 %v1229_v6  ;;  %v1237_v12 = vld [vmem:[#allocation7 + $0x84] ss:$16 sps:$4 sm:$0xff]   ;;  %v1241_v14 = vld [vmem:[#allocation7 + $0x80] ss:$16 sps:$4 sm:$0xff]   ;;  %v1366_v47 = vld [vmem:[#allocation7 + $0x3e8] ss:$16 sps:$4 sm:$0xff]  }
  0x2d   :  { %885 = vmatpush1.bf16.msra.mxu1 %v1230_v7  ;;  %843 = vmatprep.subr.bf16.mxu0 %v1231_v8  ;;  %v1239_v13 = vld [vmem:[#allocation7 + $0x284] ss:$16 sps:$4 sm:$0xff]   ;;  %v1242_v15 = vld [vmem:[#allocation7 + $0x280] ss:$16 sps:$4 sm:$0xff]   ;;  %v1371_v48 = vld [vmem:[#allocation7 + $0x1cc] ss:$16 sps:$4 sm:$0xff]  }
  0x2e   :  { %886 = vmatprep.subr.bf16.mxu1 %v1233_v9  ;;  %v1243_v16 = vld [vmem:[#allocation7 + $0x64] ss:$16 sps:$4 sm:$0xff]   ;;  %v1247_v18 = vld [vmem:[#allocation7 + $0x60] ss:$16 sps:$4 sm:$0xff]   ;;  %914 = vmatprep.mubr.bf16.mxu1 %v70_v54  ;;  %v1374_v49 = vld [vmem:[#allocation7 + $0x3cc] ss:$16 sps:$4 sm:$0xff]  }
  0x2f   :  { %v1245_v17 = vld [vmem:[#allocation7 + $0x264] ss:$16 sps:$4 sm:$0xff]   ;;  %v1248_v19 = vld [vmem:[#allocation7 + $0x260] ss:$16 sps:$4 sm:$0xff]  }
  0x30   :  { %844 = vmatpush1.bf16.msra.mxu0 %v1235_v10  ;;  %v1249_v20 = vld [vmem:[#allocation7 + $0x44] ss:$16 sps:$4 sm:$0xff]   ;;  %v1253_v22 = vld [vmem:[#allocation7 + $0x40] ss:$16 sps:$4 sm:$0xff]   ;;  %v1317_v10 = vld [vmem:[#allocation7 + $0xec] ss:$16 sps:$4 sm:$0xff]  }
  0x31   :  { %887 = vmatpush1.bf16.msra.mxu1 %v1236_v11  ;;  %845 = vmatprep.subr.bf16.mxu0 %v1237_v12  ;;  %v1251_v21 = vld [vmem:[#allocation7 + $0x244] ss:$16 sps:$4 sm:$0xff]   ;;  %v1254_v23 = vld [vmem:[#allocation7 + $0x240] ss:$16 sps:$4 sm:$0xff]   ;;  %v1320_v11 = vld [vmem:[#allocation7 + $0x2ec] ss:$16 sps:$4 sm:$0xff]  }
  0x32   :  { %888 = vmatprep.subr.bf16.mxu1 %v1239_v13  ;;  %v1255_v24 = vld [vmem:[#allocation7 + $0x24] ss:$16 sps:$4 sm:$0xff]   ;;  %v1259_v26 = vld [vmem:[#allocation7 + $0x20] ss:$16 sps:$4 sm:$0xff]  }
  0x33   :  { %v1257_v25 = vld [vmem:[#allocation7 + $0x224] ss:$16 sps:$4 sm:$0xff]   ;;  %v1260_v27 = vld [vmem:[#allocation7 + $0x220] ss:$16 sps:$4 sm:$0xff]  }
  0x34   :  { %846 = vmatpush1.bf16.msra.mxu0 %v1241_v14  ;;  %v1261_v28 = vld [vmem:[#allocation7 + $0x4] ss:$16 sps:$4 sm:$0xff]   ;;  %v1265_v30 = vld [vmem:[#allocation7] ss:$16 sps:$4 sm:$0xff]   ;;  %v1315_v14 = vld [vmem:[#allocation7 + $0xe8] ss:$16 sps:$4 sm:$0xff]  }
  0x35   :  { %889 = vmatpush1.bf16.msra.mxu1 %v1242_v15  ;;  %847 = vmatprep.subr.bf16.mxu0 %v1243_v16  ;;  %v1263_v29 = vld [vmem:[#allocation7 + $0x204] ss:$16 sps:$4 sm:$0xff]   ;;  %v1266_v31 = vld [vmem:[#allocation7 + $0x200] ss:$16 sps:$4 sm:$0xff]   ;;  %v1318_v15 = vld [vmem:[#allocation7 + $0x2e8] ss:$16 sps:$4 sm:$0xff]  }
  0x36   :  { %890 = vmatprep.subr.bf16.mxu1 %v1245_v17  ;;  %v1267_v32 = vld [vmem:[#allocation7 + $0x1e4] ss:$16 sps:$4 sm:$0xff]   ;;  %v1271_v34 = vld [vmem:[#allocation7 + $0x1e0] ss:$16 sps:$4 sm:$0xff]   ;;  %v1323_v16 = vld [vmem:[#allocation7 + $0xcc] ss:$16 sps:$4 sm:$0xff]  }
  0x37   :  { %v1269_v33 = vld [vmem:[#allocation7 + $0x3e4] ss:$16 sps:$4 sm:$0xff]   ;;  %v1272_v35 = vld [vmem:[#allocation7 + $0x3e0] ss:$16 sps:$4 sm:$0xff]   ;;  %v1326_v17 = vld [vmem:[#allocation7 + $0x2cc] ss:$16 sps:$4 sm:$0xff]  }
  0x38   :  { %848 = vmatpush1.bf16.msra.mxu0 %v1247_v18  ;;  %v1273_v36 = vld [vmem:[#allocation7 + $0x1c4] ss:$16 sps:$4 sm:$0xff]   ;;  %v1277_v38 = vld [vmem:[#allocation7 + $0x1c0] ss:$16 sps:$4 sm:$0xff]   ;;  %v1321_v18 = vld [vmem:[#allocation7 + $0xc8] ss:$16 sps:$4 sm:$0xff]  }
  0x39   :  { %891 = vmatpush1.bf16.msra.mxu1 %v1248_v19  ;;  %849 = vmatprep.subr.bf16.mxu0 %v1249_v20  ;;  %v1275_v37 = vld [vmem:[#allocation7 + $0x3c4] ss:$16 sps:$4 sm:$0xff]   ;;  %v1278_v39 = vld [vmem:[#allocation7 + $0x3c0] ss:$16 sps:$4 sm:$0xff]   ;;  %v1324_v19 = vld [vmem:[#allocation7 + $0x2c8] ss:$16 sps:$4 sm:$0xff]  }
  0x3a   :  { %892 = vmatprep.subr.bf16.mxu1 %v1251_v21  ;;  %v1279_v40 = vld [vmem:[#allocation7 + $0x1a4] ss:$16 sps:$4 sm:$0xff]   ;;  %v1283_v42 = vld [vmem:[#allocation7 + $0x1a0] ss:$16 sps:$4 sm:$0xff]   ;;  %v1329_v20 = vld [vmem:[#allocation7 + $0xac] ss:$16 sps:$4 sm:$0xff]  }
  0x3b   :  { %v1281_v41 = vld [vmem:[#allocation7 + $0x3a4] ss:$16 sps:$4 sm:$0xff]   ;;  %v1284_v43 = vld [vmem:[#allocation7 + $0x3a0] ss:$16 sps:$4 sm:$0xff]   ;;  %v1332_v21 = vld [vmem:[#allocation7 + $0x2ac] ss:$16 sps:$4 sm:$0xff]  }
  0x3c   :  { %850 = vmatpush1.bf16.msra.mxu0 %v1253_v22  ;;  %v1285_v44 = vld [vmem:[#allocation7 + $0x184] ss:$16 sps:$4 sm:$0xff]   ;;  %v1289_v50 = vld [vmem:[#allocation7 + $0x180] ss:$16 sps:$4 sm:$0xff]   ;;  %v1327_v22 = vld [vmem:[#allocation7 + $0xa8] ss:$16 sps:$4 sm:$0xff]  }
  0x3d   :  { %893 = vmatpush1.bf16.msra.mxu1 %v1254_v23  ;;  %851 = vmatprep.subr.bf16.mxu0 %v1255_v24  ;;  %v1287_v45 = vld [vmem:[#allocation7 + $0x384] ss:$16 sps:$4 sm:$0xff]   ;;  %v1290_v51 = vld [vmem:[#allocation7 + $0x380] ss:$16 sps:$4 sm:$0xff]   ;;  %v1330_v23 = vld [vmem:[#allocation7 + $0x2a8] ss:$16 sps:$4 sm:$0xff]  }
  0x3e   :  { %894 = vmatprep.subr.bf16.mxu1 %v1257_v25  ;;  %v1291_v52 = vld [vmem:[#allocation7 + $0x164] ss:$16 sps:$4 sm:$0xff]   ;;  %v1295_v56 = vld [vmem:[#allocation7 + $0x160] ss:$16 sps:$4 sm:$0xff]   ;;  %v1335_v24 = vld [vmem:[#allocation7 + $0x8c] ss:$16 sps:$4 sm:$0xff]  }
  0x3f   :  { %v1293_v55 = vld [vmem:[#allocation7 + $0x364] ss:$16 sps:$4 sm:$0xff]   ;;  %v1296_v57 = vld [vmem:[#allocation7 + $0x360] ss:$16 sps:$4 sm:$0xff]   ;;  %v1338_v25 = vld [vmem:[#allocation7 + $0x28c] ss:$16 sps:$4 sm:$0xff]  }
  0x40   :  { %852 = vmatpush1.bf16.msra.mxu0 %v1259_v26  ;;  %v1297_v58 = vld [vmem:[#allocation7 + $0x144] ss:$16 sps:$4 sm:$0xff]   ;;  %v1301_v60 = vld [vmem:[#allocation7 + $0x140] ss:$16 sps:$4 sm:$0xff]   ;;  %v1333_v26 = vld [vmem:[#allocation7 + $0x88] ss:$16 sps:$4 sm:$0xff]  }
  0x41   :  { %895 = vmatpush1.bf16.msra.mxu1 %v1260_v27  ;;  %853 = vmatprep.subr.bf16.mxu0 %v1261_v28  ;;  %v1299_v59 = vld [vmem:[#allocation7 + $0x344] ss:$16 sps:$4 sm:$0xff]   ;;  %v1302_v61 = vld [vmem:[#allocation7 + $0x340] ss:$16 sps:$4 sm:$0xff]   ;;  %v1336_v27 = vld [vmem:[#allocation7 + $0x288] ss:$16 sps:$4 sm:$0xff]  }
  0x42   :  { %896 = vmatprep.subr.bf16.mxu1 %v1263_v29  ;;  %v1303_v62 = vld [vmem:[#allocation7 + $0x124] ss:$16 sps:$4 sm:$0xff]   ;;  %v1307_v0 = vld [vmem:[#allocation7 + $0x120] ss:$16 sps:$4 sm:$0xff]   ;;  %v1341_v28 = vld [vmem:[#allocation7 + $0x6c] ss:$16 sps:$4 sm:$0xff]  }
  0x43   :  { %v1305_v63 = vld [vmem:[#allocation7 + $0x324] ss:$16 sps:$4 sm:$0xff]   ;;  %v1308_v1 = vld [vmem:[#allocation7 + $0x320] ss:$16 sps:$4 sm:$0xff]   ;;  %v1344_v29 = vld [vmem:[#allocation7 + $0x26c] ss:$16 sps:$4 sm:$0xff]  }
  0x44   :  { %854 = vmatpush1.bf16.msra.mxu0 %v1265_v30  ;;  %v1309_v2 = vld [vmem:[#allocation7 + $0x104] ss:$16 sps:$4 sm:$0xff]   ;;  %v1313_v4 = vld [vmem:[#allocation7 + $0x100] ss:$16 sps:$4 sm:$0xff]   ;;  %v1339_v30 = vld [vmem:[#allocation7 + $0x68] ss:$16 sps:$4 sm:$0xff]  }
  0x45   :  { %897 = vmatpush1.bf16.msra.mxu1 %v1266_v31  ;;  %855 = vmatprep.subr.bf16.mxu0 %v1267_v32  ;;  %v1311_v3 = vld [vmem:[#allocation7 + $0x304] ss:$16 sps:$4 sm:$0xff]   ;;  %v1314_v5 = vld [vmem:[#allocation7 + $0x300] ss:$16 sps:$4 sm:$0xff]   ;;  %v1342_v31 = vld [vmem:[#allocation7 + $0x268] ss:$16 sps:$4 sm:$0xff]  }
  0x46   :  { %898 = vmatprep.subr.bf16.mxu1 %v1269_v33  ;;  %v59_v6 = vld [vmem:[#allocation5] sm:$0xff]  ;;  %v61_v8 = vld [vmem:[#allocation5 + $0x10] sm:$0xff]  ;;  %v1347_v32 = vld [vmem:[#allocation7 + $0x4c] ss:$16 sps:$4 sm:$0xff]  }
  0x47   :  { %v63_v7 = vld [vmem:[#allocation5 + $0x20] sm:$0xff]  ;;  %v65_v9 = vld [vmem:[#allocation5 + $0x30] sm:$0xff]  ;;  %v1350_v33 = vld [vmem:[#allocation7 + $0x24c] ss:$16 sps:$4 sm:$0xff]  }
  0x48   :  { %856 = vmatpush2.bf16.msra.mxu0 %v1271_v34  ;;  %v1545_v12 = vpack.c.bf16 %v63_v7, %v59_v6  ;;  %v1547_v13 = vpack.c.bf16 %v65_v9, %v61_v8  ;;  %v1345_v34 = vld [vmem:[#allocation7 + $0x48] ss:$16 sps:$4 sm:$0xff]   ;;  %v1407_v8 = vld [vmem:[#allocation7 + $0x10c] ss:$16 sps:$4 sm:$0xff]  }
  0x49   :  { %899 = vmatpush2.bf16.msra.mxu1 %v1272_v35  ;;  %857 = vmatprep.subr.bf16.mxu0 %v1273_v36  ;;  %v1348_v35 = vld [vmem:[#allocation7 + $0x248] ss:$16 sps:$4 sm:$0xff]   ;;  %v1353_v36 = vld [vmem:[#allocation7 + $0x2c] ss:$16 sps:$4 sm:$0xff]  }
  0x4a   :  { %900 = vmatprep.subr.bf16.mxu1 %v1275_v37  ;;  %v1356_v37 = vld [vmem:[#allocation7 + $0x22c] ss:$16 sps:$4 sm:$0xff]   ;;  %v1399_v6 = vld [vmem:[#allocation7 + $0x128] ss:$16 sps:$4 sm:$0xff]  }
  0x4b   :  { %v1402_v7 = vld [vmem:[#allocation7 + $0x328] ss:$16 sps:$4 sm:$0xff]   ;;  %v1410_v9 = vld [vmem:[#allocation7 + $0x30c] ss:$16 sps:$4 sm:$0xff]  }
  0x4c   :  { %858 = vmatpush2.bf16.msra.mxu0 %v1277_v38  ;;  %v1351_v38 = vld [vmem:[#allocation7 + $0x28] ss:$16 sps:$4 sm:$0xff]  }
  0x4d   :  { %901 = vmatpush2.bf16.msra.mxu1 %v1278_v39  ;;  %859 = vmatprep.subr.bf16.mxu0 %v1279_v40  ;;  %v1354_v39 = vld [vmem:[#allocation7 + $0x228] ss:$16 sps:$4 sm:$0xff]   ;;  %v1359_v40 = vld [vmem:[#allocation7 + $0xc] ss:$16 sps:$4 sm:$0xff]  }
  0x4e   :  { %902 = vmatprep.subr.bf16.mxu1 %v1281_v41  ;;  %v1362_v41 = vld [vmem:[#allocation7 + $0x20c] ss:$16 sps:$4 sm:$0xff]  }
  0x50   :  { %860 = vmatpush2.bf16.msra.mxu0 %v1283_v42  ;;  %v1357_v42 = vld [vmem:[#allocation7 + $0x8] ss:$16 sps:$4 sm:$0xff]  }
  0x51   :  { %903 = vmatpush2.bf16.msra.mxu1 %v1284_v43  ;;  %861 = vmatprep.subr.bf16.mxu0 %v1285_v44  ;;  %v1360_v43 = vld [vmem:[#allocation7 + $0x208] ss:$16 sps:$4 sm:$0xff]   ;;  %v1365_v44 = vld [vmem:[#allocation7 + $0x1ec] ss:$16 sps:$4 sm:$0xff]  }
  0x52   :  { %904 = vmatprep.subr.bf16.mxu1 %v1287_v45  ;;  %v1368_v45 = vld [vmem:[#allocation7 + $0x3ec] ss:$16 sps:$4 sm:$0xff]  }
  0x54   :  { %862 = vmatpush2.bf16.msra.mxu0 %v1289_v50  ;;  %v1369_v50 = vld [vmem:[#allocation7 + $0x1c8] ss:$16 sps:$4 sm:$0xff]  }
  0x55   :  { %905 = vmatpush2.bf16.msra.mxu1 %v1290_v51  ;;  %863 = vmatprep.subr.bf16.mxu0 %v1291_v52  ;;  %v1372_v51 = vld [vmem:[#allocation7 + $0x3c8] ss:$16 sps:$4 sm:$0xff]   ;;  %v1377_v52 = vld [vmem:[#allocation7 + $0x1ac] ss:$16 sps:$4 sm:$0xff]  }
  0x56   :  { %906 = vmatprep.subr.bf16.mxu1 %v1293_v55  ;;  %v1378_v55 = vld [vmem:[#allocation7 + $0x3a8] ss:$16 sps:$4 sm:$0xff]  }
  0x58   :  { %864 = vmatpush2.bf16.msra.mxu0 %v1295_v56  ;;  %v1383_v56 = vld [vmem:[#allocation7 + $0x18c] ss:$16 sps:$4 sm:$0xff]  }
  0x59   :  { %907 = vmatpush2.bf16.msra.mxu1 %v1296_v57  ;;  %865 = vmatprep.subr.bf16.mxu0 %v1297_v58  ;;  %v1386_v57 = vld [vmem:[#allocation7 + $0x38c] ss:$16 sps:$4 sm:$0xff]   ;;  %v1381_v58 = vld [vmem:[#allocation7 + $0x188] ss:$16 sps:$4 sm:$0xff]  }
  0x5a   :  { %908 = vmatprep.subr.bf16.mxu1 %v1299_v59  ;;  %v1384_v59 = vld [vmem:[#allocation7 + $0x388] ss:$16 sps:$4 sm:$0xff]  }
  0x5c   :  { %866 = vmatpush2.bf16.msra.mxu0 %v1301_v60  ;;  %v1389_v60 = vld [vmem:[#allocation7 + $0x16c] ss:$16 sps:$4 sm:$0xff]  }
  0x5d   :  { %909 = vmatpush2.bf16.msra.mxu1 %v1302_v61  ;;  %867 = vmatprep.subr.bf16.mxu0 %v1303_v62  ;;  %v1392_v61 = vld [vmem:[#allocation7 + $0x36c] ss:$16 sps:$4 sm:$0xff]   ;;  %v1387_v62 = vld [vmem:[#allocation7 + $0x168] ss:$16 sps:$4 sm:$0xff]  }
  0x5e   :  { %910 = vmatprep.subr.bf16.mxu1 %v1305_v63  ;;  %v1390_v63 = vld [vmem:[#allocation7 + $0x368] ss:$16 sps:$4 sm:$0xff]  }
  0x60   :  { %868 = vmatpush2.bf16.msra.mxu0 %v1307_v0  ;;  %v1395_v0 = vld [vmem:[#allocation7 + $0x14c] ss:$16 sps:$4 sm:$0xff]  }
  0x61   :  { %911 = vmatpush2.bf16.msra.mxu1 %v1308_v1  ;;  %869 = vmatprep.subr.bf16.mxu0 %v1309_v2  ;;  %v1398_v1 = vld [vmem:[#allocation7 + $0x34c] ss:$16 sps:$4 sm:$0xff]   ;;  %v1393_v2 = vld [vmem:[#allocation7 + $0x148] ss:$16 sps:$4 sm:$0xff]  }
  0x62   :  { %912 = vmatprep.subr.bf16.mxu1 %v1311_v3  ;;  %v1396_v3 = vld [vmem:[#allocation7 + $0x348] ss:$16 sps:$4 sm:$0xff]  }
  0x64   :  { %870 = vmatpush2.bf16.msra.mxu0 %v1313_v4  ;;  %v1401_v4 = vld [vmem:[#allocation7 + $0x12c] ss:$16 sps:$4 sm:$0xff]  }
  0x65   :  { %913 = vmatpush2.bf16.msra.mxu1 %v1314_v5  ;;  %925 = vmatprep.subr.bf16.mxu0 %v1317_v10  ;;  %v1404_v5 = vld [vmem:[#allocation7 + $0x32c] ss:$16 sps:$4 sm:$0xff]   ;;  %v1405_v10 = vld [vmem:[#allocation7 + $0x108] ss:$16 sps:$4 sm:$0xff]  }
  0x66   :  { %968 = vmatprep.subr.bf16.mxu1 %v1320_v11  ;;  %v1408_v11 = vld [vmem:[#allocation7 + $0x308] ss:$16 sps:$4 sm:$0xff]  }
  0x67   :  { %872 = vmatmul.mubr.bf16.vlgmr.msra.gmra.mxu0 %v1545_v12 }
  0x68   :  { %915 = vmatmul.mubr.bf16.vlgmr.msra.gmra.mxu1 %v1547_v13  ;;  %926 = vmatpush1.bf16.msra.mxu0 %v1315_v14  ;;  %v1029_v14 = vlaneseq }
  0x69   :  { %969 = vmatpush1.bf16.msra.mxu1 %v1318_v15  ;;  %927 = vmatprep.subr.bf16.mxu0 %v1323_v16 }
  0x6a   :  { %970 = vmatprep.subr.bf16.mxu1 %v1326_v17  ;;  %957 = vmatprep.mubr.bf16.mxu0 %v68_v53  ;;  %v1380_v53 = vld [vmem:[#allocation7 + $0x3ac] ss:$16 sps:$4 sm:$0xff]   ;;  %v1030_v15 = vshrl.u32 %v1029_v14, 7  ;;  %v1027_v17 = vld [vmem:[%s1565_s3] sm:$0xf]  ;;  %s1504_s3 = smov [#allocation8]  }
  0x6b   :  { %1000 = vmatprep.mubr.bf16.mxu1 %v70_v54  ;;  %v1375_v54 = vld [vmem:[#allocation7 + $0x1a8] ss:$16 sps:$4 sm:$0xff]   ;;  %s1070_s7 = sshll.u32 %s1504_s3, 4  ;;  %s1071_s7 = int_to_ptr.vmem [resolvable:$true] %s1070_s7 }
  0x6c   :  { %928 = vmatpush1.bf16.msra.mxu0 %v1321_v18  ;;  %v1031_v16 = vsub.s32 0, %v1030_v15  ;;  %v1035_v18 = vsub.s32 1, %v1030_v15  ;;  %s1471_s8 = scalar_lea.vmem %s1071_s7, 1024  ;;  %p1476_p2 = scmp.lt.s32.totalorder %s1071_s7, %s1071_s7 }
  0x6d   :  { %971 = vmatpush1.bf16.msra.mxu1 %v1324_v19  ;;  %929 = vmatprep.subr.bf16.mxu0 %v1329_v20  ;;  %p1472_p1 = scmp.ne.s32.totalorder %s1071_s7, %s1471_s8  ;;  %p1477_p3 = scmp.lt.s32.totalorder %s1471_s8, %s1471_s8 }
  0x6e   :  { %972 = vmatprep.subr.bf16.mxu1 %v1332_v21  ;;  %v1011_v21 = vld [vmem:[#allocation2] sm:$0xff] }
  0x6f   :  { %p1478_p4 = por %p1477_p3, %p1476_p2 }
  0x70   :  { %930 = vmatpush1.bf16.msra.mxu0 %v1327_v22 }
  0x71   :  { %973 = vmatpush1.bf16.msra.mxu1 %v1330_v23  ;;  %931 = vmatprep.subr.bf16.mxu0 %v1335_v24  ;;  %v1032_v23 = vrot.slane %v1027_v17, %v1031_v16  ;;  %p1479_p5 = pnand %p1478_p4, %p1472_p1 }
  0x72   :  { %974 = vmatprep.subr.bf16.mxu1 %v1338_v25 }
  0x74   :  { %932 = vmatpush1.bf16.msra.mxu0 %v1333_v26  ;;  %v1012_v26 = vld [vmem:[#allocation2 + $0x8] sm:$0xff] }
  0x75   :  { %975 = vmatpush1.bf16.msra.mxu1 %v1336_v27  ;;  %933 = vmatprep.subr.bf16.mxu0 %v1341_v28  ;;  %v1036_v28 = vrot.slane %v1027_v17, %v1035_v18 }
  0x76   :  { %976 = vmatprep.subr.bf16.mxu1 %v1344_v29 }
  0x78   :  { %934 = vmatpush1.bf16.msra.mxu0 %v1339_v30  ;;  %v1015_v30 = vld [vmem:[#allocation2 + $0x20] sm:$0xff] }
  0x79   :  { %977 = vmatpush1.bf16.msra.mxu1 %v1342_v31  ;;  %935 = vmatprep.subr.bf16.mxu0 %v1347_v32 }
  0x7a   :  { %978 = vmatprep.subr.bf16.mxu1 %v1350_v33 }
  0x7c   :  { %936 = vmatpush1.bf16.msra.mxu0 %v1345_v34 }
  0x7d   :  { %979 = vmatpush1.bf16.msra.mxu1 %v1348_v35  ;;  %937 = vmatprep.subr.bf16.mxu0 %v1353_v36  ;;  %v1016_v36 = vld [vmem:[#allocation2 + $0x28] sm:$0xff] }
  0x7e   :  { %980 = vmatprep.subr.bf16.mxu1 %v1356_v37 }
  0x80   :  { %938 = vmatpush1.bf16.msra.mxu0 %v1351_v38 }
  0x81   :  { %981 = vmatpush1.bf16.msra.mxu1 %v1354_v39  ;;  %939 = vmatprep.subr.bf16.mxu0 %v1359_v40 }
  0x82   :  { %982 = vmatprep.subr.bf16.mxu1 %v1362_v41 }
  0x84   :  { %940 = vmatpush1.bf16.msra.mxu0 %v1357_v42 }
  0x85   :  { %983 = vmatpush1.bf16.msra.mxu1 %v1360_v43  ;;  %941 = vmatprep.subr.bf16.mxu0 %v1365_v44  ;;  %v1039_v43 = vsub.s32 2, %v1030_v15  ;;  %v1043_v44 = vsub.s32 3, %v1030_v15 }
  0x86   :  { %984 = vmatprep.subr.bf16.mxu1 %v1368_v45 }
  0x88   :  { %942 = vmatpush2.bf16.msra.mxu0 %v1363_v46 }
  0x89   :  { %985 = vmatpush2.bf16.msra.mxu1 %v1366_v47  ;;  %943 = vmatprep.subr.bf16.mxu0 %v1371_v48  ;;  %v1013_v47 = vld [vmem:[#allocation2 + $0x10] sm:$0xff] }
  0x8a   :  { %986 = vmatprep.subr.bf16.mxu1 %v1374_v49  ;;  %v1040_v49 = vrot.slane %v1027_v17, %v1039_v43 }
  0x8c   :  { %944 = vmatpush2.bf16.msra.mxu0 %v1369_v50 }
  0x8d   :  { %987 = vmatpush2.bf16.msra.mxu1 %v1372_v51  ;;  %945 = vmatprep.subr.bf16.mxu0 %v1377_v52  ;;  %v1014_v52 = vld [vmem:[#allocation2 + $0x18] sm:$0xff] }
  0x8e   :  { %988 = vmatprep.subr.bf16.mxu1 %v1380_v53 }
  0x90   :  { %946 = vmatpush2.bf16.msra.mxu0 %v1375_v54 }
  0x91   :  { %989 = vmatpush2.bf16.msra.mxu1 %v1378_v55  ;;  %947 = vmatprep.subr.bf16.mxu0 %v1383_v56  ;;  %v1044_v55 = vrot.slane %v1027_v17, %v1043_v44 }
  0x92   :  { %990 = vmatprep.subr.bf16.mxu1 %v1386_v57 }
  0x94   :  { %948 = vmatpush2.bf16.msra.mxu0 %v1381_v58  ;;  %v1017_v58 = vld [vmem:[#allocation2 + $0x30] sm:$0xff] }
  0x95   :  { %991 = vmatpush2.bf16.msra.mxu1 %v1384_v59  ;;  %949 = vmatprep.subr.bf16.mxu0 %v1389_v60 }
  0x96   :  { %992 = vmatprep.subr.bf16.mxu1 %v1392_v61 }
  0x98   :  { %950 = vmatpush2.bf16.msra.mxu0 %v1387_v62 }
  0x99   :  { %993 = vmatpush2.bf16.msra.mxu1 %v1390_v63  ;;  %951 = vmatprep.subr.bf16.mxu0 %v1395_v0  ;;  %v1018_v0 = vld [vmem:[#allocation2 + $0x38] sm:$0xff] }
  0x9a   :  { %994 = vmatprep.subr.bf16.mxu1 %v1398_v1 }
  0x9c   :  { %952 = vmatpush2.bf16.msra.mxu0 %v1393_v2 }
  0x9d   :  { %995 = vmatpush2.bf16.msra.mxu1 %v1396_v3  ;;  %953 = vmatprep.subr.bf16.mxu0 %v1401_v4 }
  0x9e   :  { %996 = vmatprep.subr.bf16.mxu1 %v1404_v5 }
  0xa0   :  { %954 = vmatpush2.bf16.msra.mxu0 %v1399_v6 }
  0xa1   :  { %997 = vmatpush2.bf16.msra.mxu1 %v1402_v7  ;;  %955 = vmatprep.subr.bf16.mxu0 %v1407_v8 }
  0xa2   :  { %998 = vmatprep.subr.bf16.mxu1 %v1410_v9 }
  0xa4   :  { %956 = vmatpush2.bf16.msra.mxu0 %v1405_v10 }
  0xa5   :  { %999 = vmatpush2.bf16.msra.mxu1 %v1408_v11 }
  0xa7   :  { %958 = vmatmul.mubr.bf16.vlgmr.msra.gmra.mxu0 %v1545_v12 }
  0xa8   :  { %1001 = vmatmul.mubr.bf16.vlgmr.msra.gmra.mxu1 %v1547_v13 }
 0x127   :  { %v873_v19 = vpop.f32.mrf.mxu0 }
 0x128   :  { %v916_v20 = vpop.f32.mrf.mxu1 }
 0x129   :  { %v917_v22 = vadd.f32 %v916_v20, %v873_v19  ;;  %v875_v24 = vpop.f32.mrf.mxu0 }
 0x12a   :  { %v918_v25 = vpop.f32.mrf.mxu1 }
 0x12b   :  { %v1019_v27 = vadd.f32 %v1011_v21, %v917_v22  ;;  %v919_v12 = vadd.f32 %v918_v25, %v875_v24  ;;  %v877_v13 = vpop.f32.mrf.mxu0 }
 0x12c   :  { %v920_v29 = vpop.f32.mrf.mxu1 }
 0x12d   :  { %v1049_v31 = vadd.f32 %v1032_v23, %v1019_v27  ;;  %v1020_v32 = vadd.f32 %v1012_v26, %v919_v12  ;;  %v921_v33 = vadd.f32 %v920_v29, %v877_v13  ;;  %v879_v34 = vpop.f32.mrf.mxu0 }
 0x12e   :  { %v922_v35 = vpop.f32.mrf.mxu1 }
 0x12f   :  { %1057 = vst [vmem:[#allocation8] sm:$0xff] %v1049_v31  ;;  %v1050_v37 = vadd.f32 %v1036_v28, %v1020_v32  ;;  %v1023_v38 = vadd.f32 %v1015_v30, %v921_v33  ;;  %v923_v39 = vadd.f32 %v922_v35, %v879_v34 }
 0x131   :  { %1058 = vst [vmem:[#allocation8 + $0x8] sm:$0xff] %v1050_v37  ;;  %v1053_v40 = vadd.f32 %v1032_v23, %v1023_v38  ;;  %v1024_v41 = vadd.f32 %v1016_v36, %v923_v39 }
 0x133   :  { %1061 = vst [vmem:[#allocation8 + $0x20] sm:$0xff] %v1053_v40  ;;  %v1054_v42 = vadd.f32 %v1036_v28, %v1024_v41 }
 0x135   :  { %1062 = vst [vmem:[#allocation8 + $0x28] sm:$0xff] %v1054_v42 }
 0x167   :  { %v959_v45 = vpop.f32.mrf.mxu0 }
 0x168   :  { %v1002_v46 = vpop.f32.mrf.mxu1 }
 0x169   :  { %v1003_v48 = vadd.f32 %v1002_v46, %v959_v45  ;;  %v961_v50 = vpop.f32.mrf.mxu0 }
 0x16a   :  { %v1004_v51 = vpop.f32.mrf.mxu1 }
 0x16b   :  { %v1021_v53 = vadd.f32 %v1013_v47, %v1003_v48  ;;  %v1005_v54 = vadd.f32 %v1004_v51, %v961_v50  ;;  %v963_v56 = vpop.f32.mrf.mxu0 }
 0x16c   :  { %v1006_v57 = vpop.f32.mrf.mxu1 }
 0x16d   :  { %v1051_v59 = vadd.f32 %v1040_v49, %v1021_v53  ;;  %v1022_v60 = vadd.f32 %v1014_v52, %v1005_v54  ;;  %v1007_v61 = vadd.f32 %v1006_v57, %v963_v56  ;;  %v965_v62 = vpop.f32.mrf.mxu0 }
 0x16e   :  { %v1008_v63 = vpop.f32.mrf.mxu1 }
 0x16f   :  { %1059 = vst [vmem:[#allocation8 + $0x10] sm:$0xff] %v1051_v59  ;;  %v1052_v1 = vadd.f32 %v1044_v55, %v1022_v60  ;;  %v1025_v2 = vadd.f32 %v1017_v58, %v1007_v61  ;;  %v1009_v3 = vadd.f32 %v1008_v63, %v965_v62 }
 0x171   :  { %1060 = vst [vmem:[#allocation8 + $0x18] sm:$0xff] %v1052_v1  ;;  %v1055_v4 = vadd.f32 %v1040_v49, %v1025_v2  ;;  %v1026_v5 = vadd.f32 %v1018_v0, %v1009_v3 }
 0x173   :  { %1063 = vst [vmem:[#allocation8 + $0x30] sm:$0xff] %v1055_v4  ;;  %v1056_v6 = vadd.f32 %v1044_v55, %v1026_v5 }
 0x175   :  { %1064 = vst [vmem:[#allocation8 + $0x38] sm:$0xff] %v1056_v6 }
 0x176   :  { %1482 = shalt.err (!%p1479_p5)
}
 0x177   :  { %1076 = dma.vmem_to_hbm [thread:$0]  %s1071_s7, 1024, %s1566_s4, [#allocation4], %s1499_s20, %s1499_s20, %s1500_s21  }
 0x178   :  { %1495 = dma.done.wait [#allocation4], 1024  }
 0x179   :  { %1496 = vsyncadd [#allocation4], 4294966272 }
 0x17a   :  { %1080 = vsyncpa [#allocation3], 1 }
 0x17b   :  { %1081 = vsyncpa [#allocation6], 1 }
 0x17c   :  { %1082 = vsyncpa [#allocation4], 1 }

</bundles_post_ra>
